<compile_context>
chip_gen: v5e
topology: v5e:2x2
jax: 0.10.0
libtpu: 0.0.40
codegen_flags: <defaults>
</compile_context>

<pallas_src>
import functools

import jax
import jax.numpy as jnp
from jax.experimental import pallas as pl
from jax.experimental.pallas import tpu as pltpu


_LANES = 1024                      # lane-dense last dim (8x vreg lane width)
_GOLDEN = 0x9E3779B9               # Weyl increment
_FMIX1 = 0x85EBCA6B                # murmur3 fmix32 constants
_FMIX2 = 0xC2B2AE35


def _head_dropout_kernel(seed_ref, x_ref, o_ref, *, threshold):
    block_rows, lanes = x_ref.shape
    shape = (block_rows, lanes)

    # Per-element global counter (wraps mod 2**32, which is fine for a counter).
    row = jax.lax.broadcasted_iota(jnp.int32, shape, 0).astype(jnp.uint32)
    col = jax.lax.broadcasted_iota(jnp.int32, shape, 1).astype(jnp.uint32)
    tile = pl.program_id(0).astype(jnp.uint32)
    idx = (tile * jnp.uint32(block_rows) + row) * jnp.uint32(lanes) + col

    # Counter-based PRNG: Weyl step + murmur3 fmix32 finalizer.
    h = idx * jnp.uint32(_GOLDEN) + seed_ref[0].astype(jnp.uint32)
    h ^= h >> 16
    h *= jnp.uint32(_FMIX1)
    h ^= h >> 13
    h *= jnp.uint32(_FMIX2)
    h ^= h >> 16

    # keep  <=>  uniform(h) > p  <=>  h > floor(p * 2**32)   (integer compare)
    keep = h > jnp.uint32(threshold)
    x = x_ref[...]
    o_ref[...] = jnp.where(keep, x, jnp.asarray(-1e20, dtype=x.dtype))


def head_dropout(x, p=0.5, *, seed=0, training=True):
    """Pallas implementation of HeadDropout.forward."""
    if p < 0 or p > 1:
        raise ValueError(
            "Dropout probability has to be between 0 and 1, but got {}".format(p)
        )
    if not training:
        return x

    x = jnp.asarray(x)
    orig_shape = x.shape
    n = x.size

    # Flatten to a lane-dense 2D slab; pad (rarely needed) to a multiple of 1024.
    flat = x.reshape(-1)
    pad = (-n) % _LANES
    if pad:
        flat = jnp.concatenate([flat, jnp.zeros((pad,), dtype=x.dtype)])
    rows = flat.size // _LANES
    x2 = flat.reshape(rows, _LANES)

    # ~2 MiB blocks: comfortably inside the scoped-VMEM default on every
    # generation (incl. v7x's 64 MiB physical VMEM) with double buffering,
    # and large enough to amortize per-grid-step overhead (~85% HBM roofline).
    itemsize = jnp.dtype(x.dtype).itemsize
    target_rows = max(8, (2 * 1024 * 1024) // (_LANES * itemsize))
    if rows <= target_rows:
        block_rows = rows                      # full extent: (8,128) rule satisfied
    else:
        block_rows = (target_rows // 8) * 8    # multiple of 8 sublanes

    grid = (pl.cdiv(rows, block_rows),)

    # rand > p  with rand = h / 2**32  <=>  h > floor(p * 2**32)
    threshold = min(int(float(p) * (1 << 32)), (1 << 32) - 1)

    seed_arr = jnp.asarray([seed], dtype=jnp.int32)

    out2 = pl.pallas_call(
        functools.partial(_head_dropout_kernel, threshold=threshold),
        out_shape=jax.ShapeDtypeStruct(x2.shape, x2.dtype),
        grid=grid,
        in_specs=[
            pl.BlockSpec(memory_space=pltpu.MemorySpace.SMEM),    # scalar seed
            pl.BlockSpec((block_rows, _LANES), lambda i: (i, 0)),  # x tiles
        ],
        out_specs=pl.BlockSpec((block_rows, _LANES), lambda i: (i, 0)),
        compiler_params=pltpu.CompilerParams(
            dimension_semantics=("parallel",),
        ),
    )(seed_arr, x2)

    out = out2.reshape(-1)
    if pad:
        out = out[:n]
    return out.reshape(orig_shape)


if __name__ == "__main__":
    key = jax.random.PRNGKey(0)
    # Small NCHW-like input consistent with an elementwise dropout module.
    x = jax.random.normal(key, (2, 4, 16, 16), dtype=jnp.float32)

    p = 0.5
    y = head_dropout(x, p=p, seed=0, training=True)
    y = jax.block_until_ready(y)

    # Sanity checks: every output element is either the input value (kept) or
    # exactly -1e20 (dropped); shape/dtype preserved.
    assert y.shape == x.shape and y.dtype == x.dtype
    neg_big = jnp.asarray(-1e20, dtype=x.dtype)
    kept = y == x
    dropped = y == neg_big
    assert bool(jnp.all(kept | dropped))
    drop_frac = float(jnp.mean(dropped.astype(jnp.float32)))
    assert 0.25 < drop_frac < 0.75  # p=0.5 over 2048 elements

    # Same seed -> same mask (deterministic counter-based PRNG).
    y2 = jax.block_until_ready(head_dropout(x, p=p, seed=0, training=True))
    assert bool(jnp.all(y2 == y))

    # Eval mode is identity.
    y_eval = head_dropout(x, p=p, seed=0, training=False)
    assert bool(jnp.all(y_eval == x))

    print("KERNEL_OK")
</pallas_src>

<mosaic_0001>
module attributes {stable_mosaic.version = 11 : i64} {
  func.func @_head_dropout_kernel(%arg0: i32, %arg1: memref<1xi32, #tpu.memory_space<smem>>, %arg2: memref<2x1024xf32, #tpu.memory_space<vmem>>, %arg3: memref<2x1024xf32, #tpu.memory_space<vmem>>) attributes {dimension_semantics = [#tpu.dimension_semantics<parallel>], iteration_bounds = array<i64: 1>, scalar_prefetch = 0 : i64, scratch_operands = 0 : i64, tpu.core_type = #tpu.core_type<tc>, window_params = [{transform_indices = @transform_0, window_bounds = array<i64: 1>}, {transform_indices = @transform_1, window_bounds = array<i64: 2, 1024>}, {transform_indices = @transform_2, window_bounds = array<i64: 2, 1024>}]} {
    %0 = tpu.iota {dimensions = array<i32: 0>} : vector<2x1024xi32>
    %1 = tpu.iota {dimensions = array<i32: 1>} : vector<2x1024xi32>
    %c2_i32 = arith.constant 2 : i32
    %2 = arith.muli %arg0, %c2_i32 : i32
    %3 = vector.broadcast %2 : i32 to vector<2x1024xi32>
    %4 = arith.addi %3, %0 : vector<2x1024xi32>
    %c1024_i32 = arith.constant 1024 : i32
    %5 = vector.broadcast %c1024_i32 : i32 to vector<2x1024xi32>
    %6 = arith.muli %4, %5 : vector<2x1024xi32>
    %7 = arith.addi %6, %1 : vector<2x1024xi32>
    %c-1640531527_i32 = arith.constant -1640531527 : i32
    %8 = vector.broadcast %c-1640531527_i32 : i32 to vector<2x1024xi32>
    %9 = arith.muli %7, %8 : vector<2x1024xi32>
    %c0 = arith.constant 0 : index
    %10 = memref.load %arg1[%c0] : memref<1xi32, #tpu.memory_space<smem>>
    %11 = vector.broadcast %10 : i32 to vector<2x1024xi32>
    %12 = arith.addi %9, %11 : vector<2x1024xi32>
    %c16_i32 = arith.constant 16 : i32
    %13 = vector.broadcast %c16_i32 : i32 to vector<2x1024xi32>
    %14 = arith.shrui %12, %13 : vector<2x1024xi32>
    %15 = arith.xori %12, %14 : vector<2x1024xi32>
    %c-2048144789_i32 = arith.constant -2048144789 : i32
    %16 = vector.broadcast %c-2048144789_i32 : i32 to vector<2x1024xi32>
    %17 = arith.muli %15, %16 : vector<2x1024xi32>
    %c13_i32 = arith.constant 13 : i32
    %18 = vector.broadcast %c13_i32 : i32 to vector<2x1024xi32>
    %19 = arith.shrui %17, %18 : vector<2x1024xi32>
    %20 = arith.xori %17, %19 : vector<2x1024xi32>
    %c-1028477387_i32 = arith.constant -1028477387 : i32
    %21 = vector.broadcast %c-1028477387_i32 : i32 to vector<2x1024xi32>
    %22 = arith.muli %20, %21 : vector<2x1024xi32>
    %c16_i32_0 = arith.constant 16 : i32
    %23 = vector.broadcast %c16_i32_0 : i32 to vector<2x1024xi32>
    %24 = arith.shrui %22, %23 : vector<2x1024xi32>
    %25 = arith.xori %22, %24 : vector<2x1024xi32>
    %c-2147483648_i32 = arith.constant -2147483648 : i32
    %26 = vector.broadcast %c-2147483648_i32 : i32 to vector<2x1024xi32>
    %27 = arith.cmpi ugt, %25, %26 : vector<2x1024xi32>
    %c0_1 = arith.constant 0 : index
    %c0_2 = arith.constant 0 : index
    %28 = vector.load %arg2[%c0_1, %c0_2] : memref<2x1024xf32, #tpu.memory_space<vmem>>, vector<2x1024xf32>
    %cst = arith.constant -1.000000e+20 : f32
    %29 = vector.broadcast %cst : f32 to vector<2x1024xf32>
    %30 = arith.select %27, %28, %29 : vector<2x1024xi1>, vector<2x1024xf32>
    %c0_3 = arith.constant 0 : index
    %c0_4 = arith.constant 0 : index
    %31 = vector.load %arg3[%c0_3, %c0_4] : memref<2x1024xf32, #tpu.memory_space<vmem>>, vector<2x1024xf32>
    tpu.vector_store %arg3[%c0_3, %c0_4], %30 {strides = array<i32>} : memref<2x1024xf32, #tpu.memory_space<vmem>>, vector<2x1024xf32>,
    return
  }
  func.func @transform_0(%arg0: i32) -> i32 {
    %c0_i32 = arith.constant 0 : i32
    %c0_i32_0 = arith.constant 0 : i32
    return %c0_i32 : i32
  }
  func.func @transform_1(%arg0: i32) -> (i32, i32) {
    %c0_i32 = arith.constant 0 : i32
    %c0_i32_0 = arith.constant 0 : i32
    return %arg0, %c0_i32 : i32, i32
  }
  func.func @transform_2(%arg0: i32) -> (i32, i32) {
    %c0_i32 = arith.constant 0 : i32
    %c0_i32_0 = arith.constant 0 : i32
    return %arg0, %c0_i32 : i32, i32
  }
}

</mosaic_0001>

<bundles_post_ra>
// kernel: tpu_custom_call.1
= control target key start
LH: loop header
LB: loop body
LE: loop exit
PB: predicated region body
PF: predicated region fallthrough
CT: control target
= control target key end

     0   :  { %8 = vsyncpa [#allocation4], 0  ;;  %s337_s0 = inlined_call_operand.<no memory space> [shape: s32[1], index: 0, kind: input, shape index: {}]   ;;  %s338_s1 = inlined_call_operand.hbm [shape: f32[2,1024], index: 1, kind: input, shape index: {}]   ;;  %s339_s2 = inlined_call_operand.hbm [shape: f32[2,1024], index: 2, kind: output, shape index: {}]  }
   0x1   :  { %9 = vsyncpa [#allocation5], 0  ;;  %s17_s11 = sshll.u32 %s338_s1, 4  ;;  %s293_s12 = smov [#allocation3]   ;;  %s18_s11 = int_to_ptr.hbm [resolvable:$true] %s17_s11 }
   0x2   :  { %s19_s13 = sshll.u32 %s293_s12, 4  ;;  %s20_s13 = int_to_ptr.vmem [resolvable:$true] %s19_s13 }
   0x3   :  { %22 = dma.hbm_to_vmem [thread:$0]  %s18_s11, 256, %s20_s13, [#allocation4]  }
   0x4   :  { %289 = dma.done.wait [#allocation4], 256  }
   0x5   :  { %290 = vsyncadd [#allocation4], 4294967040  ;;  %v27_v0 = vlaneseq  ;;  %v59_v3 = vstv %s337_s0  ;;  %v156_v16 = vld [vmem:[#allocation3] sm:$0xff]  ;;  %v157_v17 = vld [vmem:[#allocation3 + $0x8] sm:$0xff]  ;;  %vm201_vm0 = vcmask 1041408   ;;  %vm203_vm1 = vcmask 1045508  }
   0x6   :  { %160 = vst [vmem:[#allocation1] ss:$4 sm:$0xff] %v156_v16  ;;  %vm205_vm2 = vcmask 1043456   ;;  %s294_s0 = smov [#allocation6]   ;;  %s221_s18 = sshll.u32 %s339_s2, 4  ;;  %s222_s18 = int_to_ptr.hbm [resolvable:$true] %s221_s18 }
   0x7   :  { %v28_v1 = vshrl.u32 %v27_v0, 7  ;;  %v30_v2 = vand.u32 127, %v27_v0  ;;  %162 = vst [vmem:[#allocation1 + $0x20] ss:$4 sm:$0xff] %v157_v17  ;;  %s219_s1 = sshll.u32 %s294_s0, 4  ;;  %s220_s1 = int_to_ptr.vmem [resolvable:$true] %s219_s1 }
   0x9   :  { %v31_v4 = vadd.s32 128, %v30_v2  ;;  %v32_v5 = vadd.s32 256, %v30_v2  ;;  %v33_v6 = vadd.s32 384, %v30_v2  ;;  %v41_v7 = vmul.u32 1024, %v28_v1 }
   0xa   :  { %v34_v8 = vadd.s32 512, %v30_v2  ;;  %v35_v9 = vadd.s32 640, %v30_v2  ;;  %v36_v10 = vadd.s32 768, %v30_v2  ;;  %v37_v11 = vadd.s32 896, %v30_v2 }
   0xb   :  { %v42_v12 = vadd.s32 %v41_v7, %v30_v2  ;;  %v43_v13 = vadd.s32 %v41_v7, %v31_v4  ;;  %v44_v14 = vadd.s32 %v41_v7, %v32_v5  ;;  %v45_v15 = vadd.s32 %v41_v7, %v33_v6 }
   0xc   :  { %v46_v18 = vadd.s32 %v41_v7, %v34_v8  ;;  %v47_v19 = vadd.s32 %v41_v7, %v35_v9  ;;  %v48_v20 = vadd.s32 %v41_v7, %v36_v10  ;;  %v49_v21 = vadd.s32 %v41_v7, %v37_v11 }
   0xd   :  { %v50_v22 = vmul.u32 2654435769, %v42_v12  ;;  %v51_v23 = vmul.u32 2654435769, %v43_v13  ;;  %v52_v24 = vmul.u32 2654435769, %v44_v14 }
   0xe   :  { %v53_v25 = vmul.u32 2654435769, %v45_v15  ;;  %v54_v28 = vmul.u32 2654435769, %v46_v18  ;;  %v55_v29 = vmul.u32 2654435769, %v47_v19 }
   0xf   :  { %v60_v26 = vadd.s32 %v59_v3, %v50_v22  ;;  %v61_v27 = vadd.s32 %v59_v3, %v51_v23  ;;  %v62_v30 = vadd.s32 %v59_v3, %v52_v24  ;;  %v56_v32 = vmul.u32 2654435769, %v48_v20  ;;  %v163_v24 = vld.sshfl [vmem:[#allocation1] sm:$0xff pattern:$0x73625140] }
  0x10   :  { %v63_v31 = vadd.s32 %v59_v3, %v53_v25  ;;  %v57_v33 = vmul.u32 2654435769, %v49_v21  ;;  %v64_v36 = vadd.s32 %v59_v3, %v54_v28  ;;  %v65_v37 = vadd.s32 %v59_v3, %v55_v29  ;;  %v164_v25 = vld.sshfl [vmem:[#allocation1 + $0x8] sm:$0xff pattern:$0x73625140] }
  0x11   :  { %v68_v34 = vshrl.u32 %v60_v26, 16  ;;  %v69_v35 = vshrl.u32 %v61_v27, 16  ;;  %v70_v38 = vshrl.u32 %v62_v30, 16  ;;  %v66_v40 = vadd.s32 %v59_v3, %v56_v32 }
  0x12   :  { %v71_v39 = vshrl.u32 %v63_v31, 16  ;;  %v67_v41 = vadd.s32 %v59_v3, %v57_v33  ;;  %v72_v44 = vshrl.u32 %v64_v36, 16  ;;  %v73_v45 = vshrl.u32 %v65_v37, 16 }
  0x13   :  { %v76_v42 = vxor.u32 %v68_v34, %v60_v26  ;;  %v77_v43 = vxor.u32 %v69_v35, %v61_v27  ;;  %v78_v46 = vxor.u32 %v70_v38, %v62_v30  ;;  %v74_v50 = vshrl.u32 %v66_v40, 16  ;;  %v165_v30 = vld.sshfl [vmem:[#allocation1 + $0x10] sm:$0xff pattern:$0x73625140] }
  0x14   :  { %v79_v47 = vxor.u32 %v71_v39, %v63_v31  ;;  %v75_v51 = vshrl.u32 %v67_v41, 16  ;;  %v80_v54 = vxor.u32 %v72_v44, %v64_v36  ;;  %v81_v55 = vxor.u32 %v73_v45, %v65_v37  ;;  %v166_v31 = vld.sshfl [vmem:[#allocation1 + $0x18] sm:$0xff pattern:$0x73625140] }
  0x15   :  { %v84_v48 = vmul.u32 2246822507, %v76_v42  ;;  %v85_v49 = vmul.u32 2246822507, %v77_v43  ;;  %v86_v52 = vmul.u32 2246822507, %v78_v46  ;;  %v82_v58 = vxor.u32 %v74_v50, %v66_v40 }
  0x16   :  { %v87_v53 = vmul.u32 2246822507, %v79_v47  ;;  %v83_v59 = vxor.u32 %v75_v51, %v67_v41  ;;  %v88_v0 = vmul.u32 2246822507, %v80_v54  ;;  %v89_v1 = vmul.u32 2246822507, %v81_v55 }
  0x17   :  { %v92_v56 = vshrl.u32 %v84_v48, 13  ;;  %v93_v57 = vshrl.u32 %v85_v49, 13  ;;  %v94_v60 = vshrl.u32 %v86_v52, 13  ;;  %v90_v4 = vmul.u32 2246822507, %v82_v58 }
  0x18   :  { %v95_v61 = vshrl.u32 %v87_v53, 13  ;;  %v91_v5 = vmul.u32 2246822507, %v83_v59  ;;  %v96_v8 = vshrl.u32 %v88_v0, 13  ;;  %v97_v9 = vshrl.u32 %v89_v1, 13 }
  0x19   :  { %v100_v62 = vxor.u32 %v92_v56, %v84_v48  ;;  %v101_v63 = vxor.u32 %v93_v57, %v85_v49  ;;  %v102_v2 = vxor.u32 %v94_v60, %v86_v52  ;;  %v98_v12 = vshrl.u32 %v90_v4, 13  ;;  %v168_v55 = vld.sshfl [vmem:[#allocation1 + $0x28] sm:$0xff pattern:$0x73625140] }
  0x1a   :  { %v103_v3 = vxor.u32 %v95_v61, %v87_v53  ;;  %v99_v13 = vshrl.u32 %v91_v5, 13  ;;  %v104_v16 = vxor.u32 %v96_v8, %v88_v0  ;;  %v105_v17 = vxor.u32 %v97_v9, %v89_v1  ;;  %v169_v59 = vld.sshfl [vmem:[#allocation1 + $0x30] sm:$0xff pattern:$0x73625140] }
  0x1b   :  { %v108_v6 = vmul.u32 3266489909, %v100_v62  ;;  %v109_v7 = vmul.u32 3266489909, %v101_v63  ;;  %v110_v10 = vmul.u32 3266489909, %v102_v2  ;;  %v106_v20 = vxor.u32 %v98_v12, %v90_v4 }
  0x1c   :  { %v111_v11 = vmul.u32 3266489909, %v103_v3  ;;  %v107_v21 = vxor.u32 %v99_v13, %v91_v5  ;;  %v112_v26 = vmul.u32 3266489909, %v104_v16  ;;  %v113_v27 = vmul.u32 3266489909, %v105_v17 }
  0x1d   :  { %v116_v14 = vshrl.u32 %v108_v6, 16  ;;  %v117_v15 = vshrl.u32 %v109_v7, 16  ;;  %v118_v18 = vshrl.u32 %v110_v10, 16  ;;  %v114_v32 = vmul.u32 3266489909, %v106_v20 }
  0x1e   :  { %v119_v19 = vshrl.u32 %v111_v11, 16  ;;  %v115_v33 = vmul.u32 3266489909, %v107_v21  ;;  %v120_v36 = vshrl.u32 %v112_v26, 16  ;;  %v121_v37 = vshrl.u32 %v113_v27, 16 }
  0x1f   :  { %v124_v22 = vxor.u32 %v116_v14, %v108_v6  ;;  %v125_v23 = vxor.u32 %v117_v15, %v109_v7  ;;  %v126_v28 = vxor.u32 %v118_v18, %v110_v10  ;;  %v122_v40 = vshrl.u32 %v114_v32, 16  ;;  %v170_v62 = vld.sshfl [vmem:[#allocation1 + $0x38] sm:$0xff pattern:$0x73625140] }
  0x20   :  { %v127_v29 = vxor.u32 %v119_v19, %v111_v11  ;;  %v123_v41 = vshrl.u32 %v115_v33, 16  ;;  %v128_v43 = vxor.u32 %v120_v36, %v112_v26  ;;  %v129_v44 = vxor.u32 %v121_v37, %v113_v27  ;;  %v167_v1 = vld.sshfl [vmem:[#allocation1 + $0x20] sm:$0xff pattern:$0x73625140] }
  0x21   :  { %v231_v34 = vxor.u32 2147483648, %v124_v22  ;;  %v232_v35 = vxor.u32 2147483648, %v125_v23  ;;  %v233_v38 = vxor.u32 2147483648, %v126_v28  ;;  %v130_v50 = vxor.u32 %v122_v40, %v114_v32 }
  0x22   :  { %v234_v39 = vxor.u32 2147483648, %v127_v29  ;;  %v131_v53 = vxor.u32 %v123_v41, %v115_v33  ;;  %v235_v54 = vxor.u32 2147483648, %v128_v43  ;;  %v236_v57 = vxor.u32 2147483648, %v129_v44 }
  0x23   :  { %vm316_vm3 = vcmp.gt.s32.totalorder %v231_v34, 0  ;;  %vm137_vm4 = vcmp.gt.s32.totalorder %v232_v35, 0  ;;  %vm140_vm5 = vcmp.gt.s32.totalorder %v233_v38, 0  ;;  %v237_v58 = vxor.u32 2147483648, %v130_v50 }
  0x24   :  { %vm143_vm6 = vcmp.gt.s32.totalorder %v234_v39, 0  ;;  %v179_v45 = vsel %vm316_vm3, %v163_v24, -1e+20  ;;  %v180_v46 = vsel %vm137_vm4, %v164_v25, -1e+20  ;;  %v238_v61 = vxor.u32 2147483648, %v131_v53 }
  0x25   :  { %v181_v47 = vsel %vm140_vm5, %v165_v30, -1e+20  ;;  %v182_v48 = vsel %vm143_vm6, %v166_v31, -1e+20  ;;  %v195_v49 = vrot.slane %v180_v46, 6  ;;  %vm325_vm7 = vcmp.gt.s32.totalorder %v235_v54, 0 }
  0x26   :  { %v196_v51 = vrot.slane %v181_v47, 4  ;;  %v197_v52 = vrot.slane %v182_v48, 2  ;;  %vm149_vm8 = vcmp.gt.s32.totalorder %v236_v57, 0  ;;  %vm152_vm9 = vcmp.gt.s32.totalorder %v237_v58, 0 }
  0x27   :  { %v202_v56 = vsel %vm201_vm0, %v179_v45, %v195_v49  ;;  %vm155_vm10 = vcmp.gt.s32.totalorder %v238_v61, 0  ;;  %v184_v2 = vsel %vm149_vm8, %v168_v55, -1e+20  ;;  %v185_v3 = vsel %vm152_vm9, %v169_v59, -1e+20 }
  0x28   :  { %v204_v60 = vsel %vm203_vm1, %v196_v51, %v197_v52  ;;  %v186_v4 = vsel %vm155_vm10, %v170_v62, -1e+20  ;;  %v198_v5 = vrot.slane %v184_v2, 6  ;;  %v199_v6 = vrot.slane %v185_v3, 4 }
  0x29   :  { %v206_v63 = vsel %vm205_vm2, %v202_v56, %v204_v60  ;;  %v183_v7 = vsel %vm325_vm7, %v167_v1, -1e+20  ;;  %v200_v8 = vrot.slane %v186_v4, 2 }
  0x2a   :  { %212 = vst [vmem:[#allocation6] sm:$0xff] %v206_v63  ;;  %v207_v9 = vsel %vm201_vm0, %v183_v7, %v198_v5 }
  0x2b   :  { %v208_v10 = vsel %vm203_vm1, %v199_v6, %v200_v8 }
  0x2c   :  { %v209_v11 = vsel %vm205_vm2, %v207_v9, %v208_v10 }
  0x2d   :  { %213 = vst [vmem:[#allocation6 + $0x8] sm:$0xff] %v209_v11 }
  0x2e   :  { %224 = dma.vmem_to_hbm [thread:$0]  %s220_s1, 256, %s222_s18, [#allocation5]  }
  0x2f   :  { %291 = dma.done.wait [#allocation5], 256  }
  0x30   :  { %292 = vsyncadd [#allocation5], 4294967040 }
  0x31   :  { %229 = vsyncpa [#allocation4], 1 }
  0x32   :  { %230 = vsyncpa [#allocation5], 1 }

</bundles_post_ra>
